<compile_context>
chip_gen: v5e
topology: v5e:2x2
jax: 0.10.0
libtpu: 0.0.40
codegen_flags: <defaults>
</compile_context>

<pallas_src>
import functools

import jax
import jax.numpy as jnp
from jax.experimental import pallas as pl
from jax.experimental.pallas import tpu as pltpu

_LANES = 128
_SUBLANES = 8


# --------------------------------------------------------------------------
# Kernel
# --------------------------------------------------------------------------
def _baseline_kernel(rows, packed_ref, b_ref, o_ref):
    # packed_ref: (2*rows, 128) f32 VMEM  -- [param rows ; weight rows]
    # b_ref:      (1,)          f32 SMEM  -- bias scalar
    # o_ref:      (1, 1)        f32 SMEM  -- scalar output
    p = packed_ref[0:rows, :]          # static view, (8,128)-tile aligned
    w = packed_ref[rows:2 * rows, :]   # static view, (8,128)-tile aligned
    prod = p * w                       # VPU elementwise
    total = jnp.sum(prod)              # lane + sublane reduce (XLU) -> scalar
    # Identity activation -> just the affine projection.
    o_ref[0, 0] = total + b_ref[0]


# --------------------------------------------------------------------------
# Packing (run ONCE at parameter-init time, not per forward call)
# --------------------------------------------------------------------------
def pack_params(param: jax.Array, weight: jax.Array) -> tuple[jax.Array, int]:
    """Pack param (1, D) and weight (1, D) into one (2*rows, 128) f32 array.

    The feature axis is repacked sublane/lane-dense and zero-padded so that
    rows is a multiple of 8; padded zeros contribute 0 to the dot product.
    Both operands MUST be packed with this same layout.
    """
    assert param.ndim == 2 and param.shape[0] == 1
    assert weight.shape == param.shape
    D = param.shape[1]

    pad = (-D) % (_SUBLANES * _LANES)  # rows become a multiple of 8
    p = param.reshape(-1).astype(jnp.float32)
    w = weight.reshape(-1).astype(jnp.float32)
    if pad:
        p = jnp.pad(p, (0, pad))
        w = jnp.pad(w, (0, pad))
    rows = (D + pad) // _LANES
    packed = jnp.concatenate(
        [p.reshape(rows, _LANES), w.reshape(rows, _LANES)], axis=0
    )
    return packed, rows


# --------------------------------------------------------------------------
# Forward on prepacked parameters (the hot path) + custom VJP
# --------------------------------------------------------------------------
def _forward_packed(packed: jax.Array, bias: jax.Array) -> jax.Array:
    rows = packed.shape[0] // 2
    assert packed.shape == (2 * rows, _LANES) and packed.dtype == jnp.float32
    d_padded = rows * _LANES
    b = bias.reshape(1).astype(jnp.float32)

    kernel = functools.partial(_baseline_kernel, rows)
    return pl.pallas_call(
        kernel,
        out_shape=jax.ShapeDtypeStruct((1, 1), jnp.float32),
        in_specs=[
            pl.BlockSpec(memory_space=pltpu.MemorySpace.VMEM),  # packed param+weight
            pl.BlockSpec(memory_space=pltpu.MemorySpace.SMEM),  # bias scalar
        ],
        out_specs=pl.BlockSpec(memory_space=pltpu.MemorySpace.SMEM),  # scalar out
        cost_estimate=pl.CostEstimate(
            flops=2 * d_padded, transcendentals=0, bytes_accessed=8 * d_padded + 12
        ),
    )(packed, b)


@jax.custom_vjp
def parametric_baseline_packed(packed: jax.Array, bias: jax.Array) -> jax.Array:
    """out = sum(packed[:rows] * packed[rows:]) + bias  -> (1, 1) f32."""
    return _forward_packed(packed, bias)


def _pb_fwd(packed, bias):
    return _forward_packed(packed, bias), (packed, bias)


def _pb_bwd(residuals, g):
    packed, bias = residuals
    rows = packed.shape[0] // 2
    g_scalar = g.reshape(()).astype(jnp.float32)
    # d out / d param_rows = weight_rows ; d out / d weight_rows = param_rows
    swapped = jnp.concatenate([packed[rows:], packed[:rows]], axis=0)
    d_packed = (swapped * g_scalar).astype(packed.dtype)
    d_bias = g.reshape(bias.shape).astype(bias.dtype)
    return d_packed, d_bias


parametric_baseline_packed.defvjp(_pb_fwd, _pb_bwd)


# --------------------------------------------------------------------------
# Convenience wrapper (packs then calls; prefer prepacking once at init time)
# --------------------------------------------------------------------------
def parametric_baseline(param: jax.Array, weight: jax.Array, bias: jax.Array) -> jax.Array:
    packed, _ = pack_params(param, weight)
    return parametric_baseline_packed(packed, bias)


# --------------------------------------------------------------------------
# Demo / self-check
# --------------------------------------------------------------------------
if __name__ == "__main__":
    # Deterministic parameter construction (synthetic init, no checkpoints).
    param_dim = 1024
    bias_init = 0.0

    key = jax.random.PRNGKey(0)
    k_param, k_w = jax.random.split(key)

    # self.param = torch.randn(1, param_dim)
    param = jax.random.normal(k_param, (1, param_dim), dtype=jnp.float32)

    # self.projection = init_linear(nn.Linear(param_dim, 1))
    # TODO(synk): init_linear's exact scheme is not in the spec; deterministic
    # small-scale stand-in used here (does not affect kernel semantics).
    weight = jax.random.normal(k_w, (1, param_dim), dtype=jnp.float32) / jnp.sqrt(
        jnp.float32(param_dim)
    )
    # init.constant_(self.projection.bias, bias_init)
    bias = jnp.full((1,), bias_init, dtype=jnp.float32)

    # Pack ONCE at "init time" (prepacked-parameter path).
    packed, rows = pack_params(param, weight)
    packed = jax.block_until_ready(packed)

    # Forward via the hot path.
    out = parametric_baseline_packed(packed, bias)
    jax.block_until_ready(out)

    # Correctness check against plain-JAX reference (Identity activation).
    ref = param @ weight.T + bias.reshape(1, 1)
    assert out.shape == (1, 1)
    assert jnp.allclose(out, ref, rtol=1e-5, atol=1e-5), (out, ref)

    # Gradient check: param / weight / bias are all trainable in the module.
    def loss(p, w, b):
        return parametric_baseline(p, w, b).sum()

    gp, gw, gb = jax.grad(loss, argnums=(0, 1, 2))(param, weight, bias)
    assert jnp.allclose(gp, weight, rtol=1e-5, atol=1e-5)
    assert jnp.allclose(gw, param, rtol=1e-5, atol=1e-5)
    assert jnp.allclose(gb, jnp.ones_like(bias), rtol=1e-5, atol=1e-5)

    print("KERNEL_OK")
</pallas_src>

<mosaic_0001>
module attributes {stable_mosaic.version = 11 : i64} {
  func.func @_baseline_kernel(%arg0: memref<16x128xf32, #tpu.memory_space<vmem>>, %arg1: memref<1xf32, #tpu.memory_space<smem>>, %arg2: memref<1x1xf32, #tpu.memory_space<smem>>) attributes {dimension_semantics = [], scalar_prefetch = 0 : i64, scratch_operands = 0 : i64, tpu.core_type = #tpu.core_type<tc>} {
    %c0 = arith.constant 0 : index
    %c0_0 = arith.constant 0 : index
    %0 = vector.load %arg0[%c0, %c0_0] : memref<16x128xf32, #tpu.memory_space<vmem>>, vector<8x128xf32>
    %c8 = arith.constant 8 : index
    %c0_1 = arith.constant 0 : index
    %1 = vector.load %arg0[%c8, %c0_1] : memref<16x128xf32, #tpu.memory_space<vmem>>, vector<8x128xf32>
    %2 = arith.mulf %0, %1 : vector<8x128xf32>
    %3 = vector.shape_cast %2 : vector<8x128xf32> to vector<1x8x128xf32>
    %cst = arith.constant dense<0.000000e+00> : vector<1xf32>
    %4 = vector.multi_reduction <add>, %3, %cst [1, 2] : vector<1x8x128xf32> to vector<1xf32>
    %5 = vector.shape_cast %4 : vector<1xf32> to vector<1x1x1xf32>
    %6 = vector.extract %5[0, 0, 0] : f32 from vector<1x1x1xf32>
    %c0_2 = arith.constant 0 : index
    %7 = memref.load %arg1[%c0_2] : memref<1xf32, #tpu.memory_space<smem>>
    %8 = arith.addf %6, %7 : f32
    %c0_3 = arith.constant 0 : index
    %c0_4 = arith.constant 0 : index
    %9 = memref.load %arg2[%c0_3, %c0_4] : memref<1x1xf32, #tpu.memory_space<smem>>
    memref.store %8, %arg2[%c0_3, %c0_4] : memref<1x1xf32, #tpu.memory_space<smem>>
    return
  }
}

</mosaic_0001>

<bundles_post_ra>
// kernel: tpu_custom_call.1
= control target key start
LH: loop header
LB: loop body
LE: loop exit
PB: predicated region body
PF: predicated region fallthrough
CT: control target
= control target key end

     0   :  { %8 = vsyncpa [#allocation4], 0  ;;  %s135_s0 = inlined_call_operand.hbm [shape: f32[16,128], index: 0, kind: input, shape index: {}]   ;;  %s136_s1 = inlined_call_operand.<no memory space> [shape: f32[1], index: 1, kind: input, shape index: {}]   ;;  %s137_s2 = inlined_call_operand.hbm [shape: f32[1,1], index: 2, kind: output, shape index: {}]  }
   0x1   :  { %9 = vsyncpa [#allocation5], 0  ;;  %s14_s11 = sshll.u32 %s135_s0, 4  ;;  %s107_s12 = smov [#allocation3]   ;;  %s15_s11 = int_to_ptr.hbm [resolvable:$true] %s14_s11 }
   0x2   :  { %s16_s13 = sshll.u32 %s107_s12, 4  ;;  %s108_s14 = smov 128   ;;  %s17_s13 = int_to_ptr.vmem [resolvable:$true] %s16_s13 }
   0x3   :  { %s109_s15 = smov 8  }
   0x4   :  { %22 = dma.hbm_to_vmem [thread:$0]  %s15_s11, 256, %s17_s13, [#allocation4], %s108_s14, %s108_s14, %s109_s15  }
   0x5   :  { %103 = dma.done.wait [#allocation4], 256  }
   0x6   :  { %104 = vsyncadd [#allocation4], 4294967040  ;;  %v29_v0 = vld [vmem:[#allocation3] sm:$0xff]  ;;  %v30_v1 = vld [vmem:[#allocation3 + $0x8] sm:$0xff]  ;;  %s50_s17 = sshll.u32 %s137_s2, 4  ;;  %s110_s22 = smov [#allocation6]   ;;  %s51_s17 = int_to_ptr.hbm [resolvable:$true] %s50_s17 }
   0x7   :  { %v31_v2 = vmul.f32 %v30_v1, %v29_v0 }
   0x9   :  { %32 = vadd.xlane.f32.xlu0 %v31_v2 }
  0x7c   :  { %v33_v3 = vpop.xlane.xlu0 %32 }
  0x7d   :  { %v34_v4 = vrot.slane %v33_v3, 4 }
  0x7f   :  { %v35_v5 = vadd.f32 %v34_v4, %v33_v3 }
  0x81   :  { %v36_v6 = vrot.slane %v35_v5, 2 }
  0x83   :  { %v37_v7 = vadd.f32 %v36_v6, %v35_v5 }
  0x85   :  { %v38_v8 = vrot.slane %v37_v7, 1 }
  0x87   :  { %v39_v9 = vadd.f32 %v38_v8, %v37_v7 }
  0x89   :  { %61 = vpush %v39_v9 }
  0xba   :  { %s62_s18 = spop %61 }
  0xbb   :  { %s42_s21 = sadd.f32 %s62_s18, %s136_s1 }
  0xbd   :  { %44 = sst [smem:[#allocation6]] %s42_s21 }
  0xbe   :  { %53 = dma.smem_to_hbm %s110_s22, 16, %s51_s17, [#allocation5]  }
  0xbf   :  { %105 = dma.done.wait [#allocation5], 16  }
  0xc0   :  { %106 = vsyncadd [#allocation5], 4294967280 }
  0xc1   :  { %58 = sfence }
  0xc2   :  { %59 = vsyncpa [#allocation4], 1 }
  0xc3   :  { %60 = vsyncpa [#allocation5], 1 }

</bundles_post_ra>
